<compile_context>
chip_gen: v6e
topology: v6e:2x2x1
jax: 0.10.0
libtpu: 0.0.40
codegen_flags: <defaults>
</compile_context>

<pallas_src>
import functools

import jax
import jax.numpy as jnp
from jax import lax
from jax.experimental import pallas as pl
from jax.experimental.pallas import tpu as pltpu

_MIB = 1024 * 1024


def _round_up(x, m):
    return (x + m - 1) // m * m


def _vmem_budget():
    """Generation-aware (input_buffer_budget_bytes, vmem_limit_bytes)."""
    try:
        cap = pltpu.get_tpu_info().vmem_capacity_bytes
    except Exception:
        cap = 64 * _MIB  # conservative fallback
    if cap >= 96 * _MIB:
        # v5e / v6e: 128 MiB physical VMEM -> use most of it.
        return 64 * _MIB, 96 * _MIB
    # v7x (64 MiB per TensorCore) or unknown: stay inside the 32 MiB scoped
    # default so two cores' worth of buffers never collide with physical VMEM.
    return 24 * _MIB, 32 * _MIB


def _choose_tile_n(n_rows, d, itemsize, input_budget):
    # Per output row we hold: 2 inputs x 2 pipeline buffers x D x itemsize of
    # input, plus 2 x 4B of f32 output (double-buffered (1, tile_n) row).
    per_row = 2 * 2 * d * itemsize + 2 * 4
    t = input_budget // max(per_row, 1)
    if t >= n_rows:
        return _round_up(n_rows, 8)            # single tile covers all rows
    # Multi-tile: keep the lane-dense (1, tile_n) output block 128-aligned.
    # (For enormous D this floor can exceed the budget; irrelevant for the
    # small feature dims a link predictor uses.)
    return max(128, (t // 128) * 128)


def _dot_link_kernel(xi_ref, xj_ref, o_ref, *, n_valid, tile_n):
    # Cast BEFORE the multiply: v5e has no bf16 VALU (it upconverts anyway),
    # and this avoids an extra bf16 rounding of the product vs the f32 ref.
    xi = xi_ref[...].astype(jnp.float32)
    xj = xj_ref[...].astype(jnp.float32)
    # Row-wise reduce over the lane axis, presented as a lane-dense (1, TN)
    # row.  The column->row relayout is an XLU op that hides under the input
    # DMA on all current chips.
    # TODO(synk): for D <= 64, pack k=128//D rows per lane row (free reshape
    # (N, D) -> (N//k, k*D) in the wrapper + segmented lane reduce here) to cut
    # VALU/XLU vreg count ~4x at D=32 if v7x profiling shows XLU binding.
    s = jnp.sum(xi * xj, axis=-1)[None, :]                      # (1, TN) f32
    out = jax.nn.sigmoid(s)
    # Mask rows past N: the last (clamped/OOB) input block has undefined tail
    # data; zero those lanes so the intermediate output buffer is NaN-free.
    row = pl.program_id(0) * tile_n + lax.broadcasted_iota(jnp.int32, s.shape, 1)
    out = jnp.where(row < n_valid, out, 0.0)
    o_ref[...] = out.astype(o_ref.dtype)


@functools.partial(jax.jit, static_argnames=("tile_n", "vmem_limit"))
def _run(xi, xj, *, tile_n, vmem_limit):
    n_rows, d = xi.shape
    num_tiles = pl.cdiv(n_rows, tile_n)
    n_out = num_tiles * tile_n          # only the tiny f32 output is padded

    kernel = functools.partial(_dot_link_kernel, n_valid=n_rows, tile_n=tile_n)
    out = pl.pallas_call(
        kernel,
        # f32 output regardless of input dtype (matches PyTorch's f32 path).
        out_shape=jax.ShapeDtypeStruct((1, n_out), jnp.float32),
        grid_spec=pl.GridSpec(
            grid=(num_tiles,),
            in_specs=[
                pl.BlockSpec((tile_n, d), lambda i: (i, 0)),
                pl.BlockSpec((tile_n, d), lambda i: (i, 0)),
            ],
            # Lane-dense output block: one (1, tile_n) row per grid step.
            out_specs=pl.BlockSpec((1, tile_n), lambda i: (0, i)),
        ),
        compiler_params=pltpu.CompilerParams(
            # "parallel" shards the row-tile axis across TensorCores on
            # multi-core chips (v7x); no-op on single-core v5e/v6e.
            dimension_semantics=("parallel",),
            vmem_limit_bytes=vmem_limit,
        ),
    )(xi, xj)
    return out[0, :n_rows]


def dot_product_link_predictor(x_i, x_j, *, tile_n=None):
    """sigmoid((x_i * x_j).sum(-1)) computed with a Pallas TPU kernel."""
    assert x_i.shape == x_j.shape, "x_i and x_j must have the same shape"
    *lead, d = x_i.shape
    xi = x_i.reshape(-1, d)
    xj = x_j.reshape(-1, d)
    n_rows = xi.shape[0]
    itemsize = jnp.dtype(x_i.dtype).itemsize

    input_budget, vmem_limit = _vmem_budget()
    if tile_n is None:
        tile_n = _choose_tile_n(n_rows, d, itemsize, input_budget)
    elif tile_n >= n_rows:
        tile_n = _round_up(n_rows, 8)
    else:
        tile_n = max(128, (tile_n // 128) * 128)

    out = _run(xi, xj, tile_n=tile_n, vmem_limit=vmem_limit)
    return out.reshape(tuple(lead))


if __name__ == "__main__":
    key = jax.random.PRNGKey(0)
    k1, k2, k3, k4 = jax.random.split(key, 4)

    # Small shapes consistent with the module: 8 candidate edges, hidden 32.
    N, D = 8, 32
    x_i = jax.random.normal(k1, (N, D), dtype=jnp.float32)
    x_j = jax.random.normal(k2, (N, D), dtype=jnp.float32)
    out = dot_product_link_predictor(x_i, x_j)
    jax.block_until_ready(out)
    ref = jax.nn.sigmoid(jnp.sum(x_i * x_j, axis=-1))
    assert out.shape == (N,)
    assert jnp.allclose(out, ref, atol=1e-6), "mismatch vs reference (small)"

    # Ragged shape (N % 8 != 0) exercising the no-pad clamped-tail path.
    N2, D2 = 300, 32
    y_i = jax.random.normal(k3, (N2, D2), dtype=jnp.float32)
    y_j = jax.random.normal(k4, (N2, D2), dtype=jnp.float32)
    out2 = dot_product_link_predictor(y_i, y_j)
    jax.block_until_ready(out2)
    ref2 = jax.nn.sigmoid(jnp.sum(y_i * y_j, axis=-1))
    assert out2.shape == (N2,)
    assert jnp.allclose(out2, ref2, atol=1e-6), "mismatch vs reference (ragged)"

    # Force the multi-tile path (grid > 1 with a clamped last input block).
    out3 = dot_product_link_predictor(y_i, y_j, tile_n=128)
    jax.block_until_ready(out3)
    assert jnp.allclose(out3, ref2, atol=1e-6), "mismatch vs reference (multi-tile)"

    print("KERNEL_OK")
</pallas_src>

<mosaic_0001>
module attributes {stable_mosaic.version = 11 : i64} {
  func.func @_dot_link_kernel(%arg0: i32, %arg1: memref<8x32xf32, #tpu.memory_space<vmem>>, %arg2: memref<8x32xf32, #tpu.memory_space<vmem>>, %arg3: memref<1x8xf32, #tpu.memory_space<vmem>>) attributes {dimension_semantics = [#tpu.dimension_semantics<parallel>], iteration_bounds = array<i64: 1>, scalar_prefetch = 0 : i64, scratch_operands = 0 : i64, tpu.core_type = #tpu.core_type<tc>, window_params = [{transform_indices = @transform_0, window_bounds = array<i64: 8, 32>}, {transform_indices = @transform_1, window_bounds = array<i64: 8, 32>}, {transform_indices = @transform_2, window_bounds = array<i64: 1, 8>}]} {
    %c0 = arith.constant 0 : index
    %c0_0 = arith.constant 0 : index
    %0 = vector.load %arg1[%c0, %c0_0] : memref<8x32xf32, #tpu.memory_space<vmem>>, vector<8x32xf32>
    %c0_1 = arith.constant 0 : index
    %c0_2 = arith.constant 0 : index
    %1 = vector.load %arg2[%c0_1, %c0_2] : memref<8x32xf32, #tpu.memory_space<vmem>>, vector<8x32xf32>
    %2 = arith.mulf %0, %1 : vector<8x32xf32>
    %cst = arith.constant dense<0.000000e+00> : vector<8xf32>
    %3 = vector.multi_reduction <add>, %2, %cst [1] : vector<8x32xf32> to vector<8xf32>
    %4 = vector.shape_cast %3 : vector<8xf32> to vector<1x8xf32>
    %5 = arith.negf %4 : vector<1x8xf32>
    %6 = math.exp %5 : vector<1x8xf32>
    %cst_3 = arith.constant 1.000000e+00 : f32
    %7 = vector.broadcast %cst_3 : f32 to vector<1x8xf32>
    %8 = arith.addf %7, %6 : vector<1x8xf32>
    %9 = arith.divf %7, %8 : vector<1x8xf32>
    %c8_i32 = arith.constant 8 : i32
    %10 = arith.muli %arg0, %c8_i32 : i32
    %11 = tpu.iota {dimensions = array<i32: 1>} : vector<1x8xi32>
    %12 = vector.broadcast %10 : i32 to vector<1x8xi32>
    %13 = arith.addi %12, %11 : vector<1x8xi32>
    %c8_i32_4 = arith.constant 8 : i32
    %14 = vector.broadcast %c8_i32_4 : i32 to vector<1x8xi32>
    %15 = arith.cmpi slt, %13, %14 : vector<1x8xi32>
    %cst_5 = arith.constant 0.000000e+00 : f32
    %16 = vector.broadcast %cst_5 : f32 to vector<1x8xf32>
    %17 = arith.select %15, %9, %16 : vector<1x8xi1>, vector<1x8xf32>
    %c0_6 = arith.constant 0 : index
    %c0_7 = arith.constant 0 : index
    %18 = vector.load %arg3[%c0_6, %c0_7] : memref<1x8xf32, #tpu.memory_space<vmem>>, vector<1x8xf32>
    tpu.vector_store %arg3[%c0_6, %c0_7], %17 {strides = array<i32>} : memref<1x8xf32, #tpu.memory_space<vmem>>, vector<1x8xf32>,
    return
  }
  func.func @transform_0(%arg0: i32) -> (i32, i32) {
    %c0_i32 = arith.constant 0 : i32
    %c0_i32_0 = arith.constant 0 : i32
    return %arg0, %c0_i32 : i32, i32
  }
  func.func @transform_1(%arg0: i32) -> (i32, i32) {
    %c0_i32 = arith.constant 0 : i32
    %c0_i32_0 = arith.constant 0 : i32
    return %arg0, %c0_i32 : i32, i32
  }
  func.func @transform_2(%arg0: i32) -> (i32, i32) {
    %c0_i32 = arith.constant 0 : i32
    %c0_i32_0 = arith.constant 0 : i32
    return %c0_i32, %arg0 : i32, i32
  }
}

</mosaic_0001>

<bundles_post_ra>
// kernel: _run.1
= control target key start
LH: loop header
LB: loop body
LE: loop exit
PB: predicated region body
PF: predicated region fallthrough
CT: control target
= control target key end

     0   :  { %7 = vsyncpa [#allocation3], 0  ;;  %s181_s0 = inlined_call_operand.hbm [shape: f32[8,32], index: 0, kind: input, shape index: {}]   ;;  %s182_s1 = inlined_call_operand.hbm [shape: f32[8,32], index: 1, kind: input, shape index: {}]   ;;  %s183_s2 = inlined_call_operand.hbm [shape: f32[1,8], index: 2, kind: output, shape index: {}]  }
   0x1   :  { %8 = vsyncpa [#allocation6], 0 }
   0x2   :  { %9 = vsyncpa [#allocation4], 0  ;;  %s154_s9 = smov [#allocation2]   ;;  %s155_s11 = smov [#allocation5]  }
   0x3   :  { %s16_s10 = sshll.u32 %s154_s9, 4  ;;  %s26_s12 = sshll.u32 %s155_s11, 4  ;;  %s17_s10 = int_to_ptr.vmem [resolvable:$true] %s16_s10  ;;  %s27_s12 = int_to_ptr.vmem [resolvable:$true] %s26_s12 }
   0x4   :  { %s96_s13 = scalar_lea.vmem %s17_s10, 128  ;;  %p101_p1 = scmp.lt.s32.totalorder %s17_s10, %s17_s10 }
   0x5   :  { %p97_p0 = scmp.ne.s32.totalorder %s17_s10, %s96_s13  ;;  %p102_p2 = scmp.lt.s32.totalorder %s96_s13, %s96_s13 }
   0x7   :  { %p103_p3 = por %p102_p2, %p101_p1 }
   0x9   :  { %p104_p4 = pnand %p103_p3, %p97_p0 }
   0xb   :  { %107 = shalt.err (!%p104_p4)
}
   0xc   :  { %19 = dma.hbm_to_vmem [thread:$0]  %s181_s0, 128, %s17_s10, [#allocation3]  }
   0xd   :  { %s116_s16 = scalar_lea.vmem %s27_s12, 128  ;;  %p121_p6 = scmp.lt.s32.totalorder %s27_s12, %s27_s12 }
   0xe   :  { %p117_p5 = scmp.ne.s32.totalorder %s27_s12, %s116_s16  ;;  %p122_p7 = scmp.lt.s32.totalorder %s116_s16, %s116_s16 }
  0x10   :  { %p123_p8 = por %p122_p7, %p121_p6 }
  0x12   :  { %p124_p9 = pnand %p123_p8, %p117_p5 }
  0x14   :  { %127 = shalt.err (!%p124_p9)
}
  0x15   :  { %29 = dma.hbm_to_vmem [thread:$0]  %s182_s1, 128, %s27_s12, [#allocation6]  }
  0x16   :  { %148 = dma.done.wait [#allocation3], 128  }
  0x17   :  { %149 = vsyncadd [#allocation3], 4294967168 }
  0x18   :  { %150 = dma.done.wait [#allocation6], 128  }
  0x19   :  { %151 = vsyncadd [#allocation6], 4294967168  ;;  %v36_v0 = vld [vmem:[#allocation2] sm:$0xff]  ;;  %v37_v1 = vld [vmem:[#allocation5] sm:$0xff]  ;;  %vm39_vm0 = vcmask 261120   ;;  %v50_v8 = vlaneseq  ;;  %s156_s0 = smov [#allocation7]  }
  0x1a   :  { %v38_v2 = vmul.f32 %v37_v1, %v36_v0  ;;  %s70_s1 = sshll.u32 %s156_s0, 4  ;;  %vm62_vm2 = vcmask 57344   ;;  %s71_s1 = int_to_ptr.vmem [resolvable:$true] %s70_s1 }
  0x1b   :  { %v51_v9 = vand.u32 127, %v50_v8  ;;  %v57_v10 = vshrl.u32 %v50_v8, 7  ;;  %s128_s19 = scalar_lea.vmem %s71_s1, 16  ;;  %s132_s20 = scalar_lea.vmem %s71_s1, 32 }
  0x1c   :  { %v40_v3 = vsel %vm39_vm0, %v38_v2, 0.0  ;;  %p129_p10 = scmp.ne.s32.totalorder %s71_s1, %s128_s19  ;;  %p133_p11 = scmp.lt.s32.totalorder %s71_s1, %s71_s1 }
  0x1d   :  { %41 = vadd.xlane.f32.xlu0 %v40_v3  ;;  %v58_v11 = vsub.s32 %v51_v9, %v57_v10  ;;  %vm54_vm1 = vcmp.lt.s32.totalorder %v51_v9, 8  ;;  %p134_p12 = scmp.lt.s32.totalorder %s132_s20, %s128_s19 }
  0x1f   :  { %p135_p13 = por %p134_p12, %p133_p11 }
  0x21   :  { %p136_p0 = pnand %p135_p13, %p129_p10 }
  0xa6   :  { %v42_v4 = vpop.xlane.xlu0 %41 }
  0xa7   :  { %v80_v5 = vmul.f32 -1.442695, %v42_v4 }
  0xa9   :  { %84 = vpow2.f32 %v80_v5 }
  0xb6   :  { %v85_v6 = vpop.eup %84 }
  0xb7   :  { %v46_v7 = vadd.f32 1.0, %v85_v6 }
  0xb9   :  { %86 = vrcp.f32 %v46_v7 }
  0xc6   :  { %v87_v12 = vpop.eup %86 }
  0xc7   :  { %v59_v13 = vrot.slane %v87_v12, %v58_v11 }
  0xc9   :  { %v61_v14 = vsel %vm54_vm1, %v59_v13, 0.0 }
  0xca   :  { %63 = vst.msk [vmem:[#allocation7] sm:$0x1] %vm62_vm2, %v61_v14 }
  0xcb   :  { %139 = shalt.err (!%p136_p0)
}
  0xcc   :  { %73 = dma.vmem_to_hbm [thread:$0]  %s71_s1, 16, %s183_s2, [#allocation4]  }
  0xcd   :  { %152 = dma.done.wait [#allocation4], 16  }
  0xce   :  { %153 = vsyncadd [#allocation4], 4294967280 }
  0xcf   :  { %77 = vsyncpa [#allocation3], 1 }
  0xd0   :  { %78 = vsyncpa [#allocation6], 1 }
  0xd1   :  { %79 = vsyncpa [#allocation4], 1 }

</bundles_post_ra>
